<compile_context>
chip_gen: v6e
topology: v6e:2x2x1
jax: 0.10.0
libtpu: 0.0.40
codegen_flags: <defaults>
</compile_context>

<pallas_src>
import functools

import jax
import jax.numpy as jnp
import numpy as np
from jax.experimental import pallas as pl
from jax.experimental.pallas import tpu as pltpu

NEG_INF = -1e30
MASK_BIG = 1e30
LEAKY_SLOPE = 0.2          # negative_slope of the GATConv LeakyReLU
LANE = 128
SUBLANE = 8
VMEM_LIMIT_BYTES = 40 * 1024 * 1024


def _round_up(x, m):
    return (x + m - 1) // m * m


def _fit_tile(dim, cap):
    """Largest multiple of 128 <= cap that divides dim (dim is a 128-multiple)."""
    t = min(dim, cap)
    t = max(LANE, (t // LANE) * LANE)
    while dim % t:
        t -= LANE
    return t


# ---------------------------------------------------------------------------
# Kernel 1: projection matmuls (bf16 operands, f32 MXU accumulate)
# ---------------------------------------------------------------------------
def _mm_kernel(x_ref, w_ref, o_ref):
    o_ref[...] = jnp.dot(x_ref[...], w_ref[...],
                         preferred_element_type=jnp.float32).astype(o_ref.dtype)


def _mm_kernel_acc(x_ref, w_ref, o_ref, acc_ref):
    @pl.when(pl.program_id(2) == 0)
    def _():
        acc_ref[...] = jnp.zeros_like(acc_ref)

    acc_ref[...] += jnp.dot(x_ref[...], w_ref[...],
                            preferred_element_type=jnp.float32)

    @pl.when(pl.program_id(2) == pl.num_programs(2) - 1)
    def _():
        o_ref[...] = acc_ref[...].astype(o_ref.dtype)


def _matmul(x, w, *, out_dtype=jnp.float32, tm_cap=256, tn_cap=256,
            tk_cap=2048):
    m, k = x.shape
    k2, n = w.shape
    assert k == k2
    tm = _fit_tile(m, tm_cap)
    tn = _fit_tile(n, tn_cap)
    tk = _fit_tile(k, tk_cap)
    bytes_accessed = (x.dtype.itemsize * m * k + w.dtype.itemsize * k * n
                      + jnp.dtype(out_dtype).itemsize * m * n)
    ce = pl.CostEstimate(flops=2 * m * n * k, transcendentals=0,
                         bytes_accessed=bytes_accessed)

    if tk == k:
        # Whole K in one block: no k grid axis, no accumulator, no init/finalize.
        return pl.pallas_call(
            _mm_kernel,
            out_shape=jax.ShapeDtypeStruct((m, n), out_dtype),
            grid_spec=pltpu.PrefetchScalarGridSpec(
                num_scalar_prefetch=0,
                grid=(m // tm, n // tn),
                in_specs=[pl.BlockSpec((tm, k), lambda i, j: (i, 0)),
                          pl.BlockSpec((k, tn), lambda i, j: (0, j))],
                out_specs=pl.BlockSpec((tm, tn), lambda i, j: (i, j)),
            ),
            compiler_params=pltpu.CompilerParams(
                dimension_semantics=("parallel", "parallel"),
                vmem_limit_bytes=VMEM_LIMIT_BYTES),
            cost_estimate=ce,
        )(x, w)

    return pl.pallas_call(
        _mm_kernel_acc,
        out_shape=jax.ShapeDtypeStruct((m, n), out_dtype),
        grid_spec=pltpu.PrefetchScalarGridSpec(
            num_scalar_prefetch=0,
            grid=(m // tm, n // tn, k // tk),
            in_specs=[pl.BlockSpec((tm, tk), lambda i, j, kk: (i, kk)),
                      pl.BlockSpec((tk, tn), lambda i, j, kk: (kk, j))],
            out_specs=pl.BlockSpec((tm, tn), lambda i, j, kk: (i, j)),
            scratch_shapes=[pltpu.VMEM((tm, tn), jnp.float32)],
        ),
        compiler_params=pltpu.CompilerParams(
            dimension_semantics=("parallel", "parallel", "arbitrary"),
            vmem_limit_bytes=VMEM_LIMIT_BYTES),
        cost_estimate=ce,
    )(x, w)


# ---------------------------------------------------------------------------
# Kernel 2: masked edge-softmax + aggregation (online softmax over src blocks,
#           scalar-prefetched nonzero-block schedule)
# ---------------------------------------------------------------------------
def _gat_attn_kernel(blk_ref, cnt_ref, adj_ref, feat_ref, elt_ref, er_ref,
                     out_ref, m_scr, l_scr, acc_scr,
                     *, num_heads, head_dim, apply_elu, exact_recip):
    d = pl.program_id(0)
    s = pl.program_id(1)

    @pl.when(s == 0)
    def _():
        m_scr[...] = jnp.full_like(m_scr, NEG_INF)
        l_scr[...] = jnp.zeros_like(l_scr)
        acc_scr[...] = jnp.zeros_like(acc_scr)

    hd_pad = feat_ref.shape[1]
    tail_dim = hd_pad - (num_heads - 1) * head_dim   # last head absorbs padding

    # Only visit src blocks that actually contain edges for this dst tile.
    @pl.when(s < cnt_ref[d])
    def _():
        # Hoisted out of the (static) head loop.
        adj = adj_ref[...].astype(jnp.float32)        # [TD, TS]  0/1, dst-major
        bias = (adj - 1.0) * MASK_BIG                 # 0 on edges, -1e30 off
        el_all = elt_ref[...]                         # [8,  TS]  heads on sublanes
        er_all = er_ref[...]                          # [TD, 128] heads on lanes
        feat = feat_ref[...]                          # [TS, hd_pad] bf16

        for h in range(num_heads):                    # static unroll (5 or 1)
            width = head_dim if h < num_heads - 1 else tail_dim
            c0 = h * head_dim

            e = er_all[:, h:h + 1] + el_all[h:h + 1, :]          # [TD, TS]
            e = jnp.maximum(e, LEAKY_SLOPE * e)                  # LeakyReLU(0.2)
            e = e + bias                                         # additive mask

            m_old = m_scr[:, h:h + 1]
            m_new = jnp.maximum(m_old, jnp.max(e, axis=1, keepdims=True))
            p = jnp.exp(e - m_new) * adj              # zero mass off-edges, even
            corr = jnp.exp(m_old - m_new)             # for all-masked rows

            l_scr[:, h:h + 1] = corr * l_scr[:, h:h + 1] + jnp.sum(
                p, axis=1, keepdims=True)
            m_scr[:, h:h + 1] = m_new
            acc_scr[:, c0:c0 + width] = (
                corr * acc_scr[:, c0:c0 + width]
                + jnp.dot(p.astype(feat.dtype), feat[:, c0:c0 + width],
                          preferred_element_type=jnp.float32))

    @pl.when(s == pl.num_programs(1) - 1)
    def _():
        for h in range(num_heads):
            width = head_dim if h < num_heads - 1 else tail_dim
            c0 = h * head_dim
            l_h = l_scr[:, h:h + 1]
            if exact_recip:
                inv = jnp.where(l_h > 0.0, 1.0 / jnp.maximum(l_h, 1e-30), 0.0)
            else:
                inv = jnp.where(l_h > 0.0,
                                pl.reciprocal(l_h, approx=True),
                                jnp.zeros_like(l_h))              # zero in-degree
            r = acc_scr[:, c0:c0 + width] * inv
            if apply_elu:
                r = jnp.where(r > 0.0, r, jnp.exp(jnp.minimum(r, 0.0)) - 1.0)
            out_ref[:, c0:c0 + width] = r.astype(out_ref.dtype)


def _edge_softmax_aggregate(graph, feat, el_t, elr, *, num_heads, head_dim,
                            hd_pad, apply_elu, exact_recip, out_dtype):
    adj_pad = graph["adj"]
    block_ids = graph["block_ids"]
    block_cnt = graph["block_cnt"]
    tile_dst = graph["tile_dst"]
    tile_src = graph["tile_src"]
    nnz_blocks = graph["nnz_blocks"]
    n_pad = adj_pad.shape[0]
    nd = n_pad // tile_dst
    max_blocks = block_ids.shape[1]

    kernel = functools.partial(_gat_attn_kernel, num_heads=num_heads,
                               head_dim=head_dim, apply_elu=apply_elu,
                               exact_recip=exact_recip)
    out_bytes = jnp.dtype(out_dtype).itemsize
    ce = pl.CostEstimate(
        flops=2 * nnz_blocks * tile_dst * tile_src * (hd_pad + 4 * num_heads),
        transcendentals=2 * nnz_blocks * tile_dst * tile_src * num_heads,
        bytes_accessed=(nnz_blocks * (2 * tile_dst * tile_src        # adj bf16
                                      + 2 * tile_src * hd_pad        # feat bf16
                                      + 4 * SUBLANE * tile_src)      # el f32
                        + 4 * nd * tile_dst * LANE                   # er f32
                        + out_bytes * n_pad * hd_pad))

    return pl.pallas_call(
        kernel,
        out_shape=jax.ShapeDtypeStruct((n_pad, hd_pad), out_dtype),
        grid_spec=pltpu.PrefetchScalarGridSpec(
            num_scalar_prefetch=2,                     # block_ids, block_cnt
            grid=(nd, max_blocks),
            in_specs=[
                # adjacency tile, dst-major, bf16; only nonzero src blocks
                pl.BlockSpec((tile_dst, tile_src),
                             lambda d, s, blk, cnt: (d, blk[d, s])),
                # projected source features, bf16, lane-dense heads-on-lanes
                pl.BlockSpec((tile_src, hd_pad),
                             lambda d, s, blk, cnt: (blk[d, s], 0)),
                # el^T: heads on sublanes, source nodes on lanes (f32)
                pl.BlockSpec((SUBLANE, tile_src),
                             lambda d, s, blk, cnt: (0, blk[d, s])),
                # er: destination nodes on sublanes, heads on lanes (f32)
                pl.BlockSpec((tile_dst, LANE),
                             lambda d, s, blk, cnt: (d, 1)),
            ],
            out_specs=pl.BlockSpec((tile_dst, hd_pad),
                                   lambda d, s, blk, cnt: (d, 0)),
            scratch_shapes=[
                pltpu.VMEM((tile_dst, LANE), jnp.float32),    # running max
                pltpu.VMEM((tile_dst, LANE), jnp.float32),    # running sum
                pltpu.VMEM((tile_dst, hd_pad), jnp.float32),  # weighted-sum acc
            ],
        ),
        compiler_params=pltpu.CompilerParams(
            dimension_semantics=("parallel", "arbitrary"),
            vmem_limit_bytes=VMEM_LIMIT_BYTES),
        cost_estimate=ce,
    )(block_ids, block_cnt, adj_pad, feat, el_t, elr)


# ---------------------------------------------------------------------------
# Graph preprocessing (done once per graph, like DGL's structure build)
# ---------------------------------------------------------------------------
def prepare_graph(adj_t, *, tile_cap_dst=512, tile_cap_src=512):
    """Pad the dense dst-major adjacency mask and build the per-dst-tile
    nonzero src-block schedule used for the scalar-prefetched block skip."""
    adj = np.asarray(adj_t, dtype=np.float32)
    n = adj.shape[0]
    n_pad = _round_up(n, LANE)
    # keep >= 2 dst tiles when possible so megacore can split the dst axis
    tile_dst = _fit_tile(n_pad, min(tile_cap_dst, max(LANE, n_pad // 2)))
    tile_src = _fit_tile(n_pad, tile_cap_src)
    adj_pad = np.zeros((n_pad, n_pad), np.float32)
    adj_pad[:n, :n] = adj

    nd, ns = n_pad // tile_dst, n_pad // tile_src
    nonzero = adj_pad.reshape(nd, tile_dst, ns, tile_src).any(axis=(1, 3))
    counts = nonzero.sum(axis=1).astype(np.int32)                 # [nd]
    max_blocks = max(1, int(counts.max()))
    ids = np.zeros((nd, max_blocks), np.int32)
    for di in range(nd):
        nz = np.nonzero(nonzero[di])[0].astype(np.int32)
        if nz.size == 0:
            nz = np.zeros((1,), np.int32)
        ids[di, :nz.size] = nz
        ids[di, nz.size:] = nz[-1]      # repeat last id -> pipeline skips re-DMA

    return {
        "adj": jnp.asarray(adj_pad, jnp.bfloat16),
        "block_ids": jnp.asarray(ids),
        "block_cnt": jnp.asarray(counts),
        "nnz_blocks": int(counts.sum()),
        "tile_dst": tile_dst,
        "tile_src": tile_src,
    }


# ---------------------------------------------------------------------------
# GATConv layer + full GAT forward
# ---------------------------------------------------------------------------
def gat_conv(h_pad, weight, attn_l, attn_r, graph, *, apply_elu, exact_recip,
             out_dtype):
    """DGL-style GATConv forward (eval).  h_pad: [n_pad, k_pad] bf16 (padded).
    Returns [n_pad, hd_pad] with heads folded on lanes (== torch .flatten(1))."""
    n_pad, k_pad = h_pad.shape
    f_in, hd = weight.shape
    num_heads, head_dim = attn_l.shape
    assert num_heads <= SUBLANE and hd == num_heads * head_dim and f_in <= k_pad
    hd_pad = _round_up(hd, LANE)

    # Feature-projection weight, zero-padded, bf16 for the MXU.
    w_pad = jnp.zeros((k_pad, hd_pad), jnp.float32).at[:f_in, :hd].set(weight)
    w_pad = w_pad.astype(jnp.bfloat16)

    # a_l / a_r folded as extra matmul columns: el = (Wh)·a_l, er = (Wh)·a_r.
    # Kept in a separate f32-output matmul so the softmax logits stay f32
    # while feat streams in bf16.
    w3 = weight.reshape(f_in, num_heads, head_dim)
    wl = jnp.einsum("khd,hd->kh", w3, attn_l)
    wr = jnp.einsum("khd,hd->kh", w3, attn_r)
    w_attn = jnp.zeros((k_pad, 2 * LANE), jnp.float32)
    w_attn = w_attn.at[:f_in, :num_heads].set(wl)
    w_attn = w_attn.at[:f_in, LANE:LANE + num_heads].set(wr)
    w_attn = w_attn.astype(jnp.bfloat16)

    feat = _matmul(h_pad, w_pad, out_dtype=jnp.bfloat16)   # [n_pad, hd_pad]
    elr = _matmul(h_pad, w_attn, out_dtype=jnp.float32)    # [n_pad, 2*LANE]

    # el laid out heads-on-sublanes / nodes-on-lanes: one tiny wrapper-side
    # transpose per layer instead of an XLU transpose per tile.
    el_t = jnp.zeros((SUBLANE, n_pad), jnp.float32).at[:num_heads].set(
        elr[:, :num_heads].T)

    return _edge_softmax_aggregate(
        graph, feat, el_t, elr, num_heads=num_heads, head_dim=head_dim,
        hd_pad=hd_pad, apply_elu=apply_elu, exact_recip=exact_recip,
        out_dtype=out_dtype)


def init_gat_params(key, in_dim, num_hidden, num_classes, heads):
    """Three GATConv layers, exactly as the torch module constructs them."""
    in_dims = [in_dim, num_hidden * heads[0], num_hidden * heads[1]]
    out_dims = [num_hidden, num_hidden, num_classes]
    params = []
    for f_in, d, h in zip(in_dims, out_dims, heads):
        key, kw, kl, kr = jax.random.split(key, 4)
        w = jax.random.normal(kw, (f_in, h * d), jnp.float32) / jnp.sqrt(f_in)
        a_l = jax.random.normal(kl, (h, d), jnp.float32) / jnp.sqrt(d)
        a_r = jax.random.normal(kr, (h, d), jnp.float32) / jnp.sqrt(d)
        params.append((w, a_l, a_r))
    return params


def gat_forward(params, x, graph):
    n, f_in = x.shape
    n_pad = graph["adj"].shape[0]
    k_pad = _round_up(f_in, LANE)
    # Activations stay padded + bf16 between layers (hd == hd_pad for the
    # hidden layers), so there are no slice / re-pad round trips until the end.
    h = jnp.zeros((n_pad, k_pad), jnp.bfloat16).at[:n, :f_in].set(
        x.astype(jnp.bfloat16))
    for w, a_l, a_r in params[:-1]:
        # hidden GATConv (activation=ELU) followed by torch's .flatten(1);
        # heads are already folded onto the lane axis.
        h = gat_conv(h, w, a_l, a_r, graph, apply_elu=True,
                     exact_recip=False, out_dtype=jnp.bfloat16)
    w, a_l, a_r = params[-1]
    # last GATConv has activation=None, but the module applies ELU to the
    # logits right after -> fused into the kernel finalize (elementwise).
    out = gat_conv(h, w, a_l, a_r, graph, apply_elu=True,
                   exact_recip=True, out_dtype=jnp.float32)
    num_heads, head_dim = a_l.shape
    return out[:n, :num_heads * head_dim].reshape(n, num_heads, head_dim)


# ---------------------------------------------------------------------------
# Pure-JAX reference (numerical sanity check).  MXU inputs are rounded to bf16
# like the kernels do, so the comparison isolates kernel-structure error.
# ---------------------------------------------------------------------------
def _elu(x):
    return jnp.where(x > 0, x, jnp.expm1(x))


def _bf16r(x):
    return x.astype(jnp.bfloat16).astype(jnp.float32)


def _gat_conv_ref(h, weight, attn_l, attn_r, adj_t):
    n = h.shape[0]
    num_heads, head_dim = attn_l.shape
    feat = (_bf16r(h) @ _bf16r(weight)).reshape(n, num_heads, head_dim)
    el = jnp.einsum("nhd,hd->nh", feat, attn_l)
    er = jnp.einsum("nhd,hd->nh", feat, attn_r)
    e = er[:, None, :] + el[None, :, :]              # [dst, src, head]
    e = jnp.where(e > 0, e, LEAKY_SLOPE * e)
    mask = adj_t[:, :, None] > 0
    e = jnp.where(mask, e, -jnp.inf)
    a = jax.nn.softmax(e, axis=1)
    a = jnp.where(mask, a, 0.0)
    return jnp.einsum("dsh,shf->dhf", a, feat)


def _gat_forward_ref(params, x, adj_t):
    n = x.shape[0]
    h = x
    for w, a_l, a_r in params[:-1]:
        h = _elu(_gat_conv_ref(h, w, a_l, a_r, adj_t)).reshape(n, -1)
    w, a_l, a_r = params[-1]
    return _elu(_gat_conv_ref(h, w, a_l, a_r, adj_t))


if __name__ == "__main__":
    N, IN_DIM, NUM_CLASSES = 64, 48, 8      # small test graph
    NUM_HIDDEN = 256                        # hard-coded in the torch module
    HEADS = [5, 5, 1]                       # hard-coded in the torch module

    key = jax.random.PRNGKey(0)
    key, kx, ka, kp = jax.random.split(key, 4)
    x = jax.random.normal(kx, (N, IN_DIM), jnp.float32)

    # Dense adjacency mask stored dst-major: adj_t[v, u] = 1 iff edge u -> v
    # (v aggregates over its in-neighbours u, DGL edge_softmax convention).
    # Self-loops avoid zero in-degree rows (DGL raises on those by default).
    adj_t = (jax.random.uniform(ka, (N, N)) < 0.15).astype(jnp.float32)
    adj_t = jnp.maximum(adj_t, jnp.eye(N, dtype=jnp.float32))

    params = init_gat_params(kp, IN_DIM, NUM_HIDDEN, NUM_CLASSES, HEADS)
    graph = prepare_graph(adj_t)

    out = jax.block_until_ready(gat_forward(params, x, graph))
    assert out.shape == (N, HEADS[-1], NUM_CLASSES), out.shape
    assert bool(jnp.all(jnp.isfinite(out)))

    ref = _gat_forward_ref(params, x, adj_t)
    max_err = float(jnp.max(jnp.abs(out - ref)))
    assert max_err < 5e-2, f"mismatch vs reference: max abs err = {max_err}"

    print("KERNEL_OK")
</pallas_src>

<mosaic_0001>
module attributes {stable_mosaic.version = 11 : i64} {
  func.func @_mm_kernel(%arg0: i32, %arg1: i32, %arg2: memref<128x128xbf16, #tpu.memory_space<vmem>>, %arg3: memref<128x256xbf16, #tpu.memory_space<vmem>>, %arg4: memref<128x256xbf16, #tpu.memory_space<vmem>>) attributes {dimension_semantics = [#tpu.dimension_semantics<parallel>, #tpu.dimension_semantics<parallel>], iteration_bounds = array<i64: 1, 5>, scalar_prefetch = 0 : i64, scratch_operands = 0 : i64, tpu.core_type = #tpu.core_type<tc>, window_params = [{transform_indices = @transform_0, window_bounds = array<i64: 128, 128>}, {transform_indices = @transform_1, window_bounds = array<i64: 128, 256>}, {transform_indices = @transform_2, window_bounds = array<i64: 128, 256>}]} {
    %c0 = arith.constant 0 : index
    %c0_0 = arith.constant 0 : index
    %0 = vector.load %arg2[%c0, %c0_0] : memref<128x128xbf16, #tpu.memory_space<vmem>>, vector<128x128xbf16>
    %c0_1 = arith.constant 0 : index
    %c0_2 = arith.constant 0 : index
    %1 = vector.load %arg3[%c0_1, %c0_2] : memref<128x256xbf16, #tpu.memory_space<vmem>>, vector<128x256xbf16>
    %cst = arith.constant dense<0.000000e+00> : vector<128x256xf32>
    %2 = tpu.matmul %0, %1, %cst {dimension_numbers = #tpu.dot_dimension_numbers<[1], [0], [0], [1], [0, 0, 1, 1], [], []>} : vector<128x128xbf16>, vector<128x256xbf16>, vector<128x256xf32> -> vector<128x256xf32>
    %3 = arith.truncf %2 : vector<128x256xf32> to vector<128x256xbf16>
    %c0_3 = arith.constant 0 : index
    %c0_4 = arith.constant 0 : index
    %4 = vector.load %arg4[%c0_3, %c0_4] : memref<128x256xbf16, #tpu.memory_space<vmem>>, vector<128x256xbf16>
    tpu.vector_store %arg4[%c0_3, %c0_4], %3 {strides = array<i32>} : memref<128x256xbf16, #tpu.memory_space<vmem>>, vector<128x256xbf16>,
    return
  }
  func.func @transform_0(%arg0: i32, %arg1: i32) -> (i32, i32) {
    %c0_i32 = arith.constant 0 : i32
    %c0_i32_0 = arith.constant 0 : i32
    return %arg0, %c0_i32 : i32, i32
  }
  func.func @transform_1(%arg0: i32, %arg1: i32) -> (i32, i32) {
    %c0_i32 = arith.constant 0 : i32
    %c0_i32_0 = arith.constant 0 : i32
    return %c0_i32, %arg1 : i32, i32
  }
  func.func @transform_2(%arg0: i32, %arg1: i32) -> (i32, i32) {
    %c0_i32 = arith.constant 0 : i32
    return %arg0, %arg1 : i32, i32
  }
}

</mosaic_0001>

<bundles_post_ra>
// kernel: tpu_custom_call.1
= control target key start
LH: loop header
LB: loop body
LE: loop exit
PB: predicated region body
PF: predicated region fallthrough
CT: control target
= control target key end

     0   :  { %7 = vsyncpa [#allocation3], 0  ;;  %s1298_s0 = inlined_call_operand.hbm [shape: bf16[128,128], index: 0, kind: input, shape index: {}]   ;;  %s1299_s1 = inlined_call_operand.hbm [shape: bf16[128,1280], index: 1, kind: input, shape index: {}]   ;;  %s1300_s2 = inlined_call_operand.hbm [shape: bf16[128,1280], index: 2, kind: output, shape index: {}]  }
   0x1   :  { %8 = vsyncpa [#allocation6], 0 }
   0x2   :  { %10 = vsyncpa [#allocation6 + $0x1], 0 }
   0x3   :  { %11 = vsyncpa [#allocation4], 0 }
   0x4   :  { %13 = vsyncpa [#allocation4 + $0x1], 0  ;;  %s1076_s9 = smov 0   ;;  %s1078_s10 = smov 0  }
   0x5   :  { %s1080_s11 = smov 0   ;;  %s1082_s12 = smov 0  }
   0x6   :  { %s1084_s13 = smov 0   ;;  %s1086_s14 = smov 0  }
   0x7 LB: > { %s704_s15 = sadd.s32 4294967295, %s1047_s14   ;;  %s705_s16 = sadd.s32 4294967294, %s1047_s14   ;;  %s1047_s14 = sphi %s1086_s14, %s19_s14   ;;  %s1043_s13 = sphi %s1084_s13, %s1321_s13   ;;  %s1039_s12 = sphi %s1082_s12, %s1320_s12   ;;  %s1035_s11 = sphi %s1080_s11, %s1319_s11   ;;  %s1031_s10 = sphi %s1078_s10, %s1318_s10   ;;  %s1027_s9 = sphi %s1076_s9, %s1317_s9  }
   0x8   : > { %p71_p0 = scmp.ne.s32.totalorder %s1035_s11, %s1031_s10  ;;  %p72_p1 = scmp.eq.s32.totalorder %s1047_s14, 0 }
   0x9   : > { %p77_p2 = scmp.ne.s32.totalorder %s1031_s10, %s1027_s9  ;;  %p1113_p3 = scmp.eq.s32.totalorder %s704_s15, 0 }
   0xa   : > { %p1117_p4 = por %p72_p1, %p71_p0  ;;  %p103_p5 = scmp.eq.s32.totalorder %s704_s15, 4 }
   0xb   : > { %p1123_p6 = por %p1113_p3, %p77_p2  ;;  %p109_p7 = scmp.eq.s32.totalorder %s705_s16, 4 }
   0xc   : > { %p1127_p8 = por %p103_p5, %p71_p0  ;;  %p706_p9 = scmp.ge.s32.totalorder %s1047_s14, 1 }
   0xd   : > { %s1306_s19 = scalar_select %p1123_p6, 1, 0 }
   0xe   : > { %s1307_s20 = scalar_select %p1127_p8, 1, 0 }
   0xf   : > { %p1132_p10 = por %p109_p7, %p77_p2  ;;  %p116_p11 = scmp.lt.s32.totalorder %s1047_s14, 6 }
  0x10   : > { %s1049_s23 = smov [#allocation2]   ;;  %p816_p0 = scmp.lt.s32.totalorder %s1047_s14, 5 }
  0x11   : > { %s1308_s21 = scalar_select %p1132_p10, 1, 0 }
  0x12   : > { %p1137_p12 = pnand %p706_p9, %p116_p11  ;;  %s131_s24 = sshll.u32 %s1049_s23, 4  ;;  %s132_s24 = int_to_ptr.vmem [resolvable:$true] %s131_s24 }
  0x13   : > { %1309 = sst [smem:[#allocation11_spill]] %s1308_s21  ;;  %p1152_p2 = pnand %p816_p0, %p1117_p4 }
  0x14   : > { %p803_p13 = pneg %p1137_p12  ;;  %s28_s27 = sadd.s32 1, %s1043_s13 }
  0x15   : > { %s920_s28 = scalar_lea.vmem %s132_s24, 1024  ;;  %p928_p10 = scmp.lt.s32.totalorder %s132_s24, %s132_s24 }
  0x16   : > { %p1146_p1 = pnand %p803_p13, %p1113_p3  ;;  %p921_p7 = scmp.ne.s32.totalorder %s132_s24, %s920_s28 }
  0x17   : > { %p929_p8 = scmp.lt.s32.totalorder %s920_s28, %s920_s28 }
  0x18   : > { %p911_p5 = pneg %p1146_p1 }
  0x19   : > { %p930_p6 = por %p929_p8, %p928_p10 }
  0x1a   : > { %p923_p9 = pnand %p921_p7, %p911_p5 }
  0x1c   : > { %p924_p11 = pneg %p923_p9 }
  0x1e   : > { %p931_p13 = pnand %p930_p6, %p924_p11 }
  0x20   : > { %934 = shalt.err (!%p931_p13)
}
  0x21   : > { %s1050_s29 = smov 64   ;;  %s1051_s30 = smov 4  }
  0x22   : > { %806 = dma.hbm_to_vmem [thread:$0]  (!%p1146_p1), %s1298_s0, 1024, %s132_s24, [#allocation3], %s1050_s29, %s1050_s29, %s1051_s30  }
  0x23   : > { %p29_p4 = scmp.ge.s32.totalorder %s28_s27, 5  ;;  %s64_s5 = sadd.s32 1, %s1035_s11 }
  0x24   : > { %s145_s6 = sand.u32 1, %s1035_s11   ;;  %s761_s15 = sshll.u32 %s1043_s13, 7 }
  0x25   : > { %s1323_s27 = smov (%p29_p4, %s28_s27), 0  ;;  %s709_s7 = sshll.u32 %s145_s6, 7 }
  0x26   : > { %s61_s8 = ssub.s32 %s1043_s13, %s1323_s27  ;;  %s155_s23 = scalar_lea.hbm %s1299_s1, %s761_s15 }
  0x27   : > { %p62_p6 = scmp.eq.s32.totalorder %s61_s8, 0  ;;  %s149_s25 = scalar_lea.vmem [#allocation5], %s709_s7 }
  0x28   : > { %s156_s28 = sshll.u32 %s149_s25, 4  ;;  %s146_s24 = scalar_lea.sflag [#allocation6], %s145_s6  ;;  %s157_s28 = int_to_ptr.vmem [resolvable:$true] %s156_s28 }
  0x29   : > { %s1175_s21 = scalar_select %p62_p6, %s1035_s11, %s64_s5  }
  0x2a   : > { %p937_p8 = pneg %p1152_p2  ;;  %s948_s29 = scalar_lea.vmem %s157_s28, 2048 }
  0x2b   : > { %p949_p10 = scmp.ne.s32.totalorder %s157_s28, %s948_s29  ;;  %s1052_s30 = smov [#allocation5]  }
  0x2c   : > { %s953_s3 = sshll.u32 %s1052_s30, 4  ;;  %s954_s3 = int_to_ptr.vmem [resolvable:$false] %s953_s3 }
  0x2d   : > { %p951_p0 = pnand %p949_p10, %p937_p8  ;;  %s955_s4 = scalar_lea.vmem %s954_s3, 4096 }
  0x2e   : > { %p956_p5 = scmp.lt.s32.totalorder %s157_s28, %s954_s3  ;;  %p957_p7 = scmp.lt.s32.totalorder %s955_s4, %s948_s29 }
  0x2f   : > { %p952_p1 = pneg %p951_p0 }
  0x30   : > { %p958_p9 = por %p957_p7, %p956_p5 }
  0x32   : > { %p959_p11 = pnand %p958_p9, %p952_p1 }
  0x34   : > { %962 = shalt.err (!%p959_p11)
}
  0x35   : > { %s1053_s7 = smov 640   ;;  %s1054_s5 = smov 128  }
  0x36   : > { %s1055_s8 = smov 8   ;;  %168 = sbr.rel (%p1137_p12) target bundleno = 338 (0x152), region = 28 }
  0x37   : > { %810 = dma.hbm_to_vmem [thread:$0]  (!%p1152_p2), %s155_s23, 2048, %s157_s28, %s146_s24, %s1053_s7, %s1054_s5, %s1055_s8  }
  0x3b   : > { %1014 = dma.done.wait (%p1113_p3), [#allocation3], 1024  }
  0x3c   : > { %1016 = vsyncadd (%p1113_p3), [#allocation3], 4294966272  ;;  %s1188_s6 = sand.u32 1, %s1031_s10   ;;  %p1313_p2 = scmp.ne.s32.totalorder %s1306_s19, 0 }
  0x3d   : > { %s714_s15 = sshll.u32 %s1188_s6, 7  ;;  %s175_s16 = scalar_lea.sflag [#allocation6], %s1188_s6 }
  0x3e   : > { %s1194_s26 = scalar_lea.vmem [#allocation5], %s714_s15 }
  0x3f   : > { %1018 = dma.done.wait (%p1313_p2), %s175_s16, 2048  }
  0x40   : > { %1020 = vsyncadd (%p1313_p2), %s175_s16, 4294965248  ;;  %v1056_v0 = vmov 0   ;;  %v877_v1 = vld [vmem:[%s1194_s26 + $0x74] ss:$8 sps:$4 sm:$0xff]   ;;  %v879_v2 = vld [vmem:[%s1194_s26 + $0x70] ss:$8 sps:$4 sm:$0xff]  }
  0x41   : > { %396 = vmatprep.mubr.bf16.mxu0 %v1056_v0  ;;  %436 = vmatprep.mubr.bf16.mxu1 %v1056_v0  ;;  %v880_v3 = vld [vmem:[%s1194_s26 + $0x64] ss:$8 sps:$4 sm:$0xff]   ;;  %v882_v4 = vld [vmem:[%s1194_s26 + $0x60] ss:$8 sps:$4 sm:$0xff]   ;;  %v883_v5 = vld [vmem:[%s1194_s26 + $0x54] ss:$8 sps:$4 sm:$0xff]  }
  0x42   : > { %364 = vmatprep.subr.bf16.mxu0 %v877_v1  ;;  %779 = vmatprep.subr.bf16.mxu1 %v877_v1  ;;  %v885_v6 = vld [vmem:[%s1194_s26 + $0x50] ss:$8 sps:$4 sm:$0xff]   ;;  %v886_v7 = vld [vmem:[%s1194_s26 + $0x44] ss:$8 sps:$4 sm:$0xff]   ;;  %v888_v8 = vld [vmem:[%s1194_s26 + $0x40] ss:$8 sps:$4 sm:$0xff]  }
  0x43   : > { %365 = vmatpush1.bf16.msra.mxu0 %v879_v2  ;;  %787 = vmatpush1.bf16.msra.mxu1 %v879_v2  ;;  %v889_v9 = vld [vmem:[%s1194_s26 + $0x34] ss:$8 sps:$4 sm:$0xff]   ;;  %v891_v10 = vld [vmem:[%s1194_s26 + $0x30] ss:$8 sps:$4 sm:$0xff]   ;;  %v892_v11 = vld [vmem:[%s1194_s26 + $0x24] ss:$8 sps:$4 sm:$0xff]  }
  0x44   : > { %366 = vmatprep.subr.bf16.mxu0 %v880_v3  ;;  %780 = vmatprep.subr.bf16.mxu1 %v880_v3  ;;  %v894_v12 = vld [vmem:[%s1194_s26 + $0x20] ss:$8 sps:$4 sm:$0xff]   ;;  %v895_v13 = vld [vmem:[%s1194_s26 + $0x14] ss:$8 sps:$4 sm:$0xff]   ;;  %v897_v14 = vld [vmem:[%s1194_s26 + $0x10] ss:$8 sps:$4 sm:$0xff]  }
  0x45   : > { %v898_v15 = vld [vmem:[%s1194_s26 + $0x4] ss:$8 sps:$4 sm:$0xff]   ;;  %v900_v16 = vld [vmem:[%s1194_s26] ss:$8 sps:$4 sm:$0xff]   ;;  %v905_v21 = vld [vmem:[#allocation2 + $0x10] sm:$0xff]   ;;  %s1226_s17 = scalar_lea.vmem [#allocation7], %s714_s15 }
  0x46   : > { %v901_v17 = vld [vmem:[#allocation2] sm:$0xff]   ;;  %v903_v19 = vld [vmem:[#allocation2 + $0x8] sm:$0xff]   ;;  %v906_v22 = vld [vmem:[#allocation2 + $0x30] sm:$0xff]   ;;  %s778_s19 = sshll.u32 %s1039_s12, 7  ;;  %s606_s22 = sshll.u32 %s1226_s17, 4  ;;  %s1249_s22 = int_to_ptr.vmem [resolvable:$true] %s606_s22 }
  0x47   : > { %367 = vmatpush1.bf16.msra.mxu0 %v882_v4  ;;  %788 = vmatpush1.bf16.msra.mxu1 %v882_v4  ;;  %v902_v18 = vld [vmem:[#allocation2 + $0x20] sm:$0xff]   ;;  %v904_v20 = vld [vmem:[#allocation2 + $0x28] sm:$0xff]   ;;  %v907_v23 = vld [vmem:[#allocation2 + $0x18] sm:$0xff]   ;;  %s1247_s25 = scalar_lea.hbm %s1300_s2, %s778_s19  ;;  %s590_s12 = scalar_lea.sflag [#allocation4], %s1188_s6 }
  0x48   : > { %368 = vmatprep.subr.bf16.mxu0 %v883_v5  ;;  %781 = vmatprep.subr.bf16.mxu1 %v883_v5  ;;  %v908_v24 = vld [vmem:[#allocation2 + $0x38] sm:$0xff]   ;;  %s963_s28 = scalar_lea.vmem %s1249_s22, 2048  ;;  %p1314_p12 = scmp.ne.s32.totalorder %s1307_s20, 0 }
  0x49   : > { %p964_p3 = scmp.ne.s32.totalorder %s1249_s22, %s963_s28  ;;  %s1057_s24 = smov [#allocation7]  }
  0x4a   : > { %s967_s29 = sshll.u32 %s1057_s24, 4  ;;  %s968_s29 = int_to_ptr.vmem [resolvable:$false] %s967_s29 }
  0x4b   : > { %369 = vmatpush1.bf16.msra.mxu0 %v885_v6  ;;  %789 = vmatpush1.bf16.msra.mxu1 %v885_v6  ;;  %p965_p13 = pnand %p964_p3, %p1314_p12  ;;  %s969_s30 = scalar_lea.vmem %s968_s29, 4096 }
  0x4c   : > { %370 = vmatprep.subr.bf16.mxu0 %v886_v7  ;;  %782 = vmatprep.subr.bf16.mxu1 %v886_v7  ;;  %p970_p6 = scmp.lt.s32.totalorder %s1249_s22, %s968_s29  ;;  %p971_p8 = scmp.lt.s32.totalorder %s969_s30, %s963_s28 }
  0x4d   : > { %p966_p4 = pneg %p965_p13 }
  0x4e   : > { %p972_p10 = por %p971_p8, %p970_p6 }
  0x4f   : > { %371 = vmatpush1.bf16.msra.mxu0 %v888_v8  ;;  %790 = vmatpush1.bf16.msra.mxu1 %v888_v8 }
  0x50   : > { %372 = vmatprep.subr.bf16.mxu0 %v889_v9  ;;  %783 = vmatprep.subr.bf16.mxu1 %v889_v9  ;;  %p973_p0 = pnand %p972_p10, %p966_p4 }
  0x53   : > { %373 = vmatpush1.bf16.msra.mxu0 %v891_v10  ;;  %791 = vmatpush1.bf16.msra.mxu1 %v891_v10 }
  0x54   : > { %374 = vmatprep.subr.bf16.mxu0 %v892_v11  ;;  %784 = vmatprep.subr.bf16.mxu1 %v892_v11 }
  0x57   : > { %375 = vmatpush1.bf16.msra.mxu0 %v894_v12  ;;  %792 = vmatpush1.bf16.msra.mxu1 %v894_v12 }
  0x58   : > { %376 = vmatprep.subr.bf16.mxu0 %v895_v13  ;;  %785 = vmatprep.subr.bf16.mxu1 %v895_v13 }
  0x5b   : > { %377 = vmatpush1.bf16.msra.mxu0 %v897_v14  ;;  %793 = vmatpush1.bf16.msra.mxu1 %v897_v14 }
  0x5c   : > { %378 = vmatprep.subr.bf16.mxu0 %v898_v15  ;;  %786 = vmatprep.subr.bf16.mxu1 %v898_v15 }
  0x5f   : > { %379 = vmatpush1.bf16.msra.mxu0 %v900_v16  ;;  %794 = vmatpush1.bf16.msra.mxu1 %v900_v16 }
  0x62   : > { %397 = vmatmul.mubr.bf16.vlgmr.msra.gmra.mxu0 %v901_v17  ;;  %437 = vmatmul.mubr.bf16.vlgmr.msra.gmra.mxu1 %v902_v18 }
  0x63   : > { %406 = vmatprep.mubr.bf16.mxu0 %v1056_v0  ;;  %446 = vmatprep.mubr.bf16.mxu1 %v1056_v0 }
  0x6a   : > { %407 = vmatmul.mubr.bf16.gmra.mxu0 %v903_v19  ;;  %447 = vmatmul.mubr.bf16.gmra.mxu1 %v904_v20 }
  0x6b   : > { %416 = vmatprep.mubr.bf16.mxu0 %v1056_v0  ;;  %456 = vmatprep.mubr.bf16.mxu1 %v1056_v0 }
  0x72   : > { %417 = vmatmul.mubr.bf16.gmra.mxu0 %v905_v21  ;;  %457 = vmatmul.mubr.bf16.gmra.mxu1 %v906_v22 }
  0x73   : > { %426 = vmatprep.mubr.bf16.mxu0 %v1056_v0  ;;  %466 = vmatprep.mubr.bf16.mxu1 %v1056_v0 }
  0x7a   : > { %427 = vmatmul.mubr.bf16.gmra.mxu0 %v907_v23  ;;  %467 = vmatmul.mubr.bf16.gmra.mxu1 %v908_v24 }
 0x122   : > { %v398_v25 = vpop.f32.mrf.mxu0  ;;  %v438_v26 = vpop.f32.mrf.mxu1 }
 0x124   : > { %v400_v27 = vpop.f32.mrf.mxu0  ;;  %v440_v28 = vpop.f32.mrf.mxu1 }
 0x125   : > { %v762_v29 = vpack.c.bf16 %v400_v27, %v398_v25  ;;  %v770_v30 = vpack.c.bf16 %v440_v28, %v438_v26 }
 0x126   : > { %v402_v31 = vpop.f32.mrf.mxu0  ;;  %v442_v32 = vpop.f32.mrf.mxu1 }
 0x127   : > { %573 = vst [vmem:[%s1226_s17] sm:$0xff] %v762_v29  ;;  %581 = vst [vmem:[%s1226_s17 + $0x40] sm:$0xff] %v770_v30 }
 0x128   : > { %v404_v33 = vpop.f32.mrf.mxu0  ;;  %v444_v34 = vpop.f32.mrf.mxu1 }
 0x129   : > { %v763_v35 = vpack.c.bf16 %v404_v33, %v402_v31  ;;  %v771_v36 = vpack.c.bf16 %v444_v34, %v442_v32 }
 0x12a   : > { %v408_v37 = vpop.f32.mrf.mxu0  ;;  %v448_v38 = vpop.f32.mrf.mxu1 }
 0x12b   : > { %574 = vst [vmem:[%s1226_s17 + $0x8] sm:$0xff] %v763_v35  ;;  %582 = vst [vmem:[%s1226_s17 + $0x48] sm:$0xff] %v771_v36 }
 0x12c   : > { %v410_v39 = vpop.f32.mrf.mxu0  ;;  %v450_v40 = vpop.f32.mrf.mxu1 }
 0x12d   : > { %v764_v41 = vpack.c.bf16 %v410_v39, %v408_v37  ;;  %v772_v42 = vpack.c.bf16 %v450_v40, %v448_v38 }
 0x12e   : > { %v412_v43 = vpop.f32.mrf.mxu0  ;;  %v452_v44 = vpop.f32.mrf.mxu1 }
 0x12f   : > { %575 = vst [vmem:[%s1226_s17 + $0x10] sm:$0xff] %v764_v41  ;;  %583 = vst [vmem:[%s1226_s17 + $0x50] sm:$0xff] %v772_v42 }
 0x130   : > { %v414_v45 = vpop.f32.mrf.mxu0  ;;  %v454_v46 = vpop.f32.mrf.mxu1 }
 0x131   : > { %v765_v47 = vpack.c.bf16 %v414_v45, %v412_v43  ;;  %v773_v48 = vpack.c.bf16 %v454_v46, %v452_v44 }
 0x132   : > { %v418_v49 = vpop.f32.mrf.mxu0  ;;  %v458_v50 = vpop.f32.mrf.mxu1 }
 0x133   : > { %576 = vst [vmem:[%s1226_s17 + $0x18] sm:$0xff] %v765_v47  ;;  %584 = vst [vmem:[%s1226_s17 + $0x58] sm:$0xff] %v773_v48 }
 0x134   : > { %v420_v51 = vpop.f32.mrf.mxu0  ;;  %v460_v52 = vpop.f32.mrf.mxu1 }
 0x135   : > { %v766_v53 = vpack.c.bf16 %v420_v51, %v418_v49  ;;  %v774_v54 = vpack.c.bf16 %v460_v52, %v458_v50 }
 0x136   : > { %v422_v55 = vpop.f32.mrf.mxu0  ;;  %v462_v56 = vpop.f32.mrf.mxu1 }
 0x137   : > { %577 = vst [vmem:[%s1226_s17 + $0x20] sm:$0xff] %v766_v53  ;;  %585 = vst [vmem:[%s1226_s17 + $0x60] sm:$0xff] %v774_v54 }
 0x138   : > { %v424_v57 = vpop.f32.mrf.mxu0  ;;  %v464_v58 = vpop.f32.mrf.mxu1 }
 0x139   : > { %v767_v59 = vpack.c.bf16 %v424_v57, %v422_v55  ;;  %v775_v60 = vpack.c.bf16 %v464_v58, %v462_v56 }
 0x13a   : > { %v428_v61 = vpop.f32.mrf.mxu0  ;;  %v468_v62 = vpop.f32.mrf.mxu1 }
 0x13b   : > { %578 = vst [vmem:[%s1226_s17 + $0x28] sm:$0xff] %v767_v59  ;;  %586 = vst [vmem:[%s1226_s17 + $0x68] sm:$0xff] %v775_v60 }
 0x13c   : > { %v430_v63 = vpop.f32.mrf.mxu0  ;;  %v470_v0 = vpop.f32.mrf.mxu1 }
 0x13d   : > { %v768_v1 = vpack.c.bf16 %v430_v63, %v428_v61  ;;  %v776_v2 = vpack.c.bf16 %v470_v0, %v468_v62 }
 0x13e   : > { %v432_v3 = vpop.f32.mrf.mxu0  ;;  %v472_v4 = vpop.f32.mrf.mxu1 }
 0x13f   : > { %579 = vst [vmem:[%s1226_s17 + $0x30] sm:$0xff] %v768_v1  ;;  %587 = vst [vmem:[%s1226_s17 + $0x70] sm:$0xff] %v776_v2 }
 0x140   : > { %v434_v5 = vpop.f32.mrf.mxu0  ;;  %v474_v6 = vpop.f32.mrf.mxu1 }
 0x141   : > { %v769_v7 = vpack.c.bf16 %v434_v5, %v432_v3  ;;  %v777_v8 = vpack.c.bf16 %v474_v6, %v472_v4 }
 0x143   : > { %580 = vst [vmem:[%s1226_s17 + $0x38] sm:$0xff] %v769_v7  ;;  %588 = vst [vmem:[%s1226_s17 + $0x78] sm:$0xff] %v777_v8 }
 0x144   : > { %976 = shalt.err (!%p973_p0)
}
 0x145   : > { %s977_s3 = scalar_lea.hbm %s1247_s25, 2048  ;;  %s981_s5 = scalar_lea.hbm %s1300_s2, 10240 }
 0x146   : > { %p978_p1 = scmp.ne.s32.totalorder %s1247_s25, %s977_s3  ;;  %p982_p9 = scmp.lt.s32.totalorder %s1247_s25, %s1300_s2 }
 0x147   : > { %p983_p11 = scmp.lt.s32.totalorder %s981_s5, %s977_s3 }
 0x148   : > { %p979_p5 = pnand %p978_p1, %p1314_p12 }
 0x149   : > { %p984_p2 = por %p983_p11, %p982_p9 }
 0x14a   : > { %p980_p7 = pneg %p979_p5 }
 0x14c   : > { %p985_p3 = pnand %p984_p2, %p980_p7 }
 0x14e   : > { %988 = shalt.err (!%p985_p3)
}
 0x14f   : > { %s1058_s16 = smov 128   ;;  %s1059_s26 = smov 640  }
 0x150   : > { %s1060_s17 = smov 8  }
 0x151   : > { %801 = dma.vmem_to_hbm [thread:$0]  (%p1314_p12), %s1249_s22, 2048, %s1247_s25, %s590_s12, %s1058_s16, %s1059_s26, %s1060_s17  }
 0x152 PF: > { %s1315_s19 = sld [smem:[#allocation11_spill]]  ;;  %p818_p13 = scmp.ge.s32.totalorder %s1047_s14, 2 }
 0x153   : > { %s621_s18 = sand.u32 1, %s1027_s9  }
 0x154   : > { %s622_s23 = scalar_lea.sflag [#allocation4], %s621_s18 }
 0x158   : > { %p1316_p4 = scmp.ne.s32.totalorder %s1315_s19, 0 }
 0x15a   : > { %p812_p6 = pnand %p818_p13, %p1316_p4 }
 0x15c   : > { %p813_p8 = pneg %p812_p6 }
 0x15e   : > { %1022 = dma.done.wait (%p813_p8), %s622_s23, 2048  }
 0x15f   : > { %1024 = vsyncadd (%p813_p8), %s622_s23, 4294965248  ;;  %s19_s14 = sadd.s32 1, %s1047_s14   ;;  %s1317_s9 = smov %s1031_s10 }
 0x160   : > { %p16_p10 = scmp.ge.s32.totalorder %s19_s14, 7   ;;  %s1318_s10 = smov %s1035_s11 }
 0x161   : > { %s1319_s11 = smov %s1175_s21  ;;  %s1320_s12 = smov %s1043_s13 }
 0x162   : > { %s1321_s13 = smov %s1323_s27  ;;  %18 = sbr.rel (!%p16_p10) target bundleno = 7 (0x7), region = 79 }
 0x167   :  { %627 = vsyncpa [#allocation3], 1 }
 0x168   :  { %629 = vsyncpa [#allocation3 + $0x1], 1 }
 0x169   :  { %630 = vsyncpa [#allocation6], 1 }
 0x16a   :  { %632 = vsyncpa [#allocation6 + $0x1], 1 }
 0x16b   :  { %633 = vsyncpa [#allocation4], 1 }
 0x16c   :  { %635 = vsyncpa [#allocation4 + $0x1], 1 }

</bundles_post_ra>
